<compile_context>
chip_gen: v6e
topology: v6e:2x2x1
jax: 0.10.0
libtpu: 0.0.40
codegen_flags: <defaults>
</compile_context>

<pallas_src>
import jax
import jax.numpy as jnp
from jax.experimental import pallas as pl
from jax.experimental.pallas import tpu as pltpu


def _scaled_sinusoidal_iota_kernel(scale_ref, inv_freq_ref, angle_off_ref, out_ref):
    # scale_ref     : SMEM (1,)           learnable scale
    # inv_freq_ref  : VMEM (1, width)     per-lane frequency slope (pack-scaled)
    # angle_off_ref : VMEM (1, width)     per-lane angle offset (lane pos offset + pi/2 phase)
    # out_ref       : VMEM (tile_rows, width)
    tile_rows, width = out_ref.shape
    base = pl.program_id(0) * tile_rows
    row = base + jax.lax.broadcasted_iota(jnp.int32, (tile_rows, width), 0)
    angle = row.astype(jnp.float32) * inv_freq_ref[...] + angle_off_ref[...]
    out_ref[...] = (jnp.sin(angle) * scale_ref[0]).astype(out_ref.dtype)


def _scaled_sinusoidal_pos_kernel(scale_ref, pos_ref, inv_freq_ref, phase_ref, out_ref):
    # Explicit-pos path (no lane packing): pos_ref is a (tile_rows, 1) column.
    angle = pos_ref[...] * inv_freq_ref[...] + phase_ref[...]
    out_ref[...] = (jnp.sin(angle) * scale_ref[0]).astype(out_ref.dtype)


def _choose_tile_rows(rows, width):
    """Tile rows: ~4 MiB per output buffer (double-buffered by the pipeline),
    multiple of 8, capped at 1024 to amortize per-grid-step overhead while staying
    well under scoped VMEM on v5e/v6e (32 MiB default) and v7x (64 MiB physical)."""
    budget_bytes = 4 * 1024 * 1024
    t = budget_bytes // (width * 4)
    t = max(8, min(1024, t))
    t = (t // 8) * 8
    if t >= rows:
        return rows  # single block spanning the full row extent (block == full dim is legal)
    return t


def scaled_sinusoidal_embedding(x, scale, inv_freq, pos=None):
    """Pallas equivalent of ScaledSinusoidalEmbedding.forward.

    x        : (batch, seq, dim) -- only seq is read (matches PyTorch semantics)
    scale    : (1,) learnable scale parameter
    inv_freq : (half_dim,) buffer
    pos      : optional (seq,) positions; defaults to arange(seq)
    returns  : (seq, dim) float32 = scale * [sin(pos*inv_freq), cos(pos*inv_freq)]
    """
    seq_len = x.shape[1]
    half_dim = inv_freq.shape[0]
    dim = 2 * half_dim

    inv_freq_f = inv_freq.astype(jnp.float32)
    scale1 = scale.astype(jnp.float32).reshape(1)
    # cos(t) = sin(t + pi/2): full-dim frequency row + phase row (precomputed, tiny).
    inv_freq_full = jnp.concatenate([inv_freq_f, inv_freq_f]).reshape(1, dim)
    phase = jnp.concatenate(
        [jnp.zeros((half_dim,), jnp.float32),
         jnp.full((half_dim,), jnp.pi / 2, jnp.float32)]
    ).reshape(1, dim)

    if pos is None:
        # Pack several consecutive positions per 128-lane row when dim < 128 so
        # stores are lane-dense (unmasked vst).
        pack = 1
        if dim < 128 and 128 % dim == 0 and seq_len % (128 // dim) == 0:
            pack = 128 // dim
        width = dim * pack
        rows = seq_len // pack

        invf_row = jnp.tile(inv_freq_full, (1, pack))                       # (1, width)
        lane_off = jnp.repeat(jnp.arange(pack, dtype=jnp.float32), dim
                              ).reshape(1, width)                           # position offset per lane
        angle_off = lane_off * invf_row + jnp.tile(phase, (1, pack))        # (1, width)
        invf_scaled = invf_row * jnp.float32(pack)                          # slope per packed row

        tile_rows = _choose_tile_rows(rows, width)
        grid = (pl.cdiv(rows, tile_rows),)

        out = pl.pallas_call(
            _scaled_sinusoidal_iota_kernel,
            out_shape=jax.ShapeDtypeStruct((rows, width), jnp.float32),
            grid=grid,
            in_specs=[
                pl.BlockSpec(memory_space=pltpu.SMEM),            # scale (scalar)
                pl.BlockSpec((1, width), lambda i: (0, 0)),       # inv_freq slope (resident)
                pl.BlockSpec((1, width), lambda i: (0, 0)),       # angle offset (resident)
            ],
            out_specs=pl.BlockSpec((tile_rows, width), lambda i: (i, 0)),
            compiler_params=pltpu.CompilerParams(
                dimension_semantics=("parallel",)),
        )(scale1, invf_scaled, angle_off)
        return out.reshape(seq_len, dim)

    # Explicit-pos path: pos comes in as a (seq, 1) column, no lane packing.
    pos_f = pos.astype(jnp.float32).reshape(seq_len, 1)
    tile_rows = _choose_tile_rows(seq_len, dim)
    grid = (pl.cdiv(seq_len, tile_rows),)

    return pl.pallas_call(
        _scaled_sinusoidal_pos_kernel,
        out_shape=jax.ShapeDtypeStruct((seq_len, dim), jnp.float32),
        grid=grid,
        in_specs=[
            pl.BlockSpec(memory_space=pltpu.SMEM),                # scale (scalar)
            pl.BlockSpec((tile_rows, 1), lambda i: (i, 0)),       # pos column
            pl.BlockSpec((1, dim), lambda i: (0, 0)),             # inv_freq (resident)
            pl.BlockSpec((1, dim), lambda i: (0, 0)),             # phase (resident)
        ],
        out_specs=pl.BlockSpec((tile_rows, dim), lambda i: (i, 0)),
        compiler_params=pltpu.CompilerParams(
            dimension_semantics=("parallel",)),
    )(scale1, pos_f, inv_freq_full, phase)


if __name__ == "__main__":
    # Module config (matches __init__): dim must be even.
    dim = 32
    theta = 10000.0
    half_dim = dim // 2

    # Deterministic parameter / buffer init exactly as in __init__.
    scale = jnp.ones((1,), dtype=jnp.float32) * (dim ** -0.5)
    freq_seq = jnp.arange(half_dim, dtype=jnp.float32) / half_dim
    inv_freq = theta ** (-freq_seq)

    # Example input: (batch=2, seq=8, dim=32); only seq is actually consumed.
    key = jax.random.PRNGKey(0)
    x = jax.random.normal(key, (2, 8, dim), dtype=jnp.float32)

    # --- default (pos=None) path, lane-packed (dim=32 -> 4 positions per 128-lane row)
    out = jax.block_until_ready(scaled_sinusoidal_embedding(x, scale, inv_freq))
    pos_ref = jnp.arange(x.shape[1], dtype=jnp.float32)
    emb_ref = pos_ref[:, None] * inv_freq[None, :]
    ref = jnp.concatenate([jnp.sin(emb_ref), jnp.cos(emb_ref)], axis=-1) * scale
    assert out.shape == (x.shape[1], dim)
    assert jnp.allclose(out, ref, atol=1e-5, rtol=1e-5)

    # --- explicit pos path
    pos_in = jnp.arange(x.shape[1], dtype=jnp.float32) + 3.0
    out2 = jax.block_until_ready(
        scaled_sinusoidal_embedding(x, scale, inv_freq, pos=pos_in))
    emb_ref2 = pos_in[:, None] * inv_freq[None, :]
    ref2 = jnp.concatenate([jnp.sin(emb_ref2), jnp.cos(emb_ref2)], axis=-1) * scale
    assert jnp.allclose(out2, ref2, atol=1e-5, rtol=1e-5)

    # --- larger shape exercising the seq grid (dim=512, seq=2048 -> 2 grid steps)
    dim2, seq2 = 512, 2048
    half2 = dim2 // 2
    scale2 = jnp.ones((1,), dtype=jnp.float32) * (dim2 ** -0.5)
    inv_freq2 = theta ** (-(jnp.arange(half2, dtype=jnp.float32) / half2))
    x2 = jnp.zeros((1, seq2, dim2), dtype=jnp.float32)
    out3 = jax.block_until_ready(scaled_sinusoidal_embedding(x2, scale2, inv_freq2))
    pos3 = jnp.arange(seq2, dtype=jnp.float32)
    emb3 = pos3[:, None] * inv_freq2[None, :]
    ref3 = jnp.concatenate([jnp.sin(emb3), jnp.cos(emb3)], axis=-1) * scale2
    assert out3.shape == (seq2, dim2)
    assert jnp.allclose(out3, ref3, atol=1e-4, rtol=1e-4)

    print("KERNEL_OK")
</pallas_src>

<mosaic_0001>
module attributes {stable_mosaic.version = 11 : i64} {
  func.func @_scaled_sinusoidal_iota_kernel(%arg0: i32, %arg1: memref<1xf32, #tpu.memory_space<smem>>, %arg2: memref<1x128xf32, #tpu.memory_space<vmem>>, %arg3: memref<1x128xf32, #tpu.memory_space<vmem>>, %arg4: memref<2x128xf32, #tpu.memory_space<vmem>>) attributes {dimension_semantics = [#tpu.dimension_semantics<parallel>], iteration_bounds = array<i64: 1>, scalar_prefetch = 0 : i64, scratch_operands = 0 : i64, tpu.core_type = #tpu.core_type<tc>, window_params = [{transform_indices = @transform_0, window_bounds = array<i64: 1>}, {pipeline_mode = #tpu.pipeline_mode<synchronous>, transform_indices = @transform_1, window_bounds = array<i64: 1, 128>}, {pipeline_mode = #tpu.pipeline_mode<synchronous>, transform_indices = @transform_2, window_bounds = array<i64: 1, 128>}, {transform_indices = @transform_3, window_bounds = array<i64: 2, 128>}]} {
    %c2_i32 = arith.constant 2 : i32
    %0 = arith.muli %arg0, %c2_i32 : i32
    %1 = tpu.iota {dimensions = array<i32: 0>} : vector<2x128xi32>
    %2 = vector.broadcast %0 : i32 to vector<2x128xi32>
    %3 = arith.addi %2, %1 : vector<2x128xi32>
    %4 = arith.sitofp %3 : vector<2x128xi32> to vector<2x128xf32>
    %c0 = arith.constant 0 : index
    %c0_0 = arith.constant 0 : index
    %5 = vector.load %arg2[%c0, %c0_0] : memref<1x128xf32, #tpu.memory_space<vmem>>, vector<1x128xf32>
    %6 = vector.broadcast %5 : vector<1x128xf32> to vector<2x128xf32>
    %7 = arith.mulf %4, %6 : vector<2x128xf32>
    %c0_1 = arith.constant 0 : index
    %c0_2 = arith.constant 0 : index
    %8 = vector.load %arg3[%c0_1, %c0_2] : memref<1x128xf32, #tpu.memory_space<vmem>>, vector<1x128xf32>
    %9 = vector.broadcast %8 : vector<1x128xf32> to vector<2x128xf32>
    %10 = arith.addf %7, %9 : vector<2x128xf32>
    %11 = math.sin %10 : vector<2x128xf32>
    %c0_3 = arith.constant 0 : index
    %12 = memref.load %arg1[%c0_3] : memref<1xf32, #tpu.memory_space<smem>>
    %13 = vector.broadcast %12 : f32 to vector<2x128xf32>
    %14 = arith.mulf %11, %13 : vector<2x128xf32>
    %c0_4 = arith.constant 0 : index
    %c0_5 = arith.constant 0 : index
    %15 = vector.load %arg4[%c0_4, %c0_5] : memref<2x128xf32, #tpu.memory_space<vmem>>, vector<2x128xf32>
    tpu.vector_store %arg4[%c0_4, %c0_5], %14 {strides = array<i32>} : memref<2x128xf32, #tpu.memory_space<vmem>>, vector<2x128xf32>,
    return
  }
  func.func @transform_0(%arg0: i32) -> i32 {
    %c0_i32 = arith.constant 0 : i32
    %c0_i32_0 = arith.constant 0 : i32
    return %c0_i32 : i32
  }
  func.func @transform_1(%arg0: i32) -> (i32, i32) {
    %c0_i32 = arith.constant 0 : i32
    %c0_i32_0 = arith.constant 0 : i32
    %c0_i32_1 = arith.constant 0 : i32
    return %c0_i32, %c0_i32_0 : i32, i32
  }
  func.func @transform_2(%arg0: i32) -> (i32, i32) {
    %c0_i32 = arith.constant 0 : i32
    %c0_i32_0 = arith.constant 0 : i32
    %c0_i32_1 = arith.constant 0 : i32
    return %c0_i32, %c0_i32_0 : i32, i32
  }
  func.func @transform_3(%arg0: i32) -> (i32, i32) {
    %c0_i32 = arith.constant 0 : i32
    %c0_i32_0 = arith.constant 0 : i32
    return %arg0, %c0_i32 : i32, i32
  }
}

</mosaic_0001>

<bundles_post_ra>
// kernel: tpu_custom_call.1
= control target key start
LH: loop header
LB: loop body
LE: loop exit
PB: predicated region body
PF: predicated region fallthrough
CT: control target
= control target key end

     0   :  { %v17_v0 = vlaneseq  ;;  %s263_s0 = inlined_call_operand.<no memory space> [shape: f32[1], index: 0, kind: input, shape index: {}]   ;;  %s264_s1 = inlined_call_operand.vmem [shape: f32[1,128], index: 1, kind: input, shape index: {}]   ;;  %s265_s2 = inlined_call_operand.vmem [shape: f32[1,128], index: 2, kind: input, shape index: {}]   ;;  %s266_s3 = inlined_call_operand.hbm [shape: f32[2,128], index: 3, kind: output, shape index: {}]  }
   0x1   :  { %v160_v2 = vld [vmem:[%s264_s1] ss:$0 sm:$0xff] }
   0x2   :  { %v18_v1 = vshrl.u32 %v17_v0, 7 }
   0x3   :  { %9 = vsyncpa [#allocation4], 0  ;;  %v161_v4 = vld [vmem:[%s265_s2] ss:$0 sm:$0xff]  ;;  %v203_v18 = vmov 683565275  }
   0x4   :  { %v21_v3 = vcvt.s32.f32 %v18_v1  ;;  %v204_v20 = vmov 2475754826   ;;  %v205_v22 = vmov 2131351028   ;;  %v206_v24 = vmov 2102212464  }
   0x5   :  { %v207_v26 = vmov 920167782   ;;  %v208_v33 = vmov 1326507024   ;;  %s209_s16 = smov [#allocation3]  }
   0x6   :  { %v29_v5 = vmul.f32 %v160_v2, %v21_v3  ;;  %s152_s17 = sshll.u32 %s209_s16, 4  ;;  %s153_s17 = int_to_ptr.vmem [resolvable:$true] %s152_s17 }
   0x7   :  { %s181_s18 = scalar_lea.vmem %s153_s17, 32  ;;  %p186_p1 = scmp.lt.s32.totalorder %s153_s17, %s153_s17 }
   0x8   :  { %v236_v6 = vadd.f32 %v161_v4, %v29_v5  ;;  %p182_p0 = scmp.ne.s32.totalorder %s153_s17, %s181_s18  ;;  %p187_p2 = scmp.lt.s32.totalorder %s181_s18, %s181_s18 }
   0xa   :  { %v41_v7 = vand.u32 2139095040, %v236_v6  ;;  %v38_v9 = vand.u32 2147483647, %v236_v6  ;;  %vm40_vm7 = vcmp.lt.s32.totalorder %v236_v6, 0  ;;  %vm130_vm12 = vweird.f32 %v236_v6  ;;  %p188_p3 = por %p187_p2, %p186_p1 }
   0xc   :  { %v42_v8 = vshrl.u32 %v41_v7, 23  ;;  %v45_v12 = vand.u32 8388607, %v38_v9  ;;  %vm39_vm8 = vcmp.le.f32.partialorder %v38_v9, 0.7853982  ;;  %p189_p4 = pnand %p188_p3, %p182_p0 }
   0xe   :  { %v162_v10 = vadd.s32 4294967169, %v42_v8  ;;  %v46_v15 = vor.u32 8388608, %v45_v12 }
  0x10   :  { %v48_v11 = vadd.s32 1, %v162_v10  ;;  %v86_v35 = vshll.u32 %v46_v15, 8 }
  0x12   :  { %vm49_vm0 = vcmp.gt.s32.totalorder %v48_v11, 0 }
  0x13   :  { %v50_v13 = vsel %vm49_vm0, %v48_v11, 0 }
  0x14   :  { %v52_v14 = vand.u32 31, %v50_v13  ;;  %v51_v16 = vshrl.u32 %v50_v13, 5 }
  0x16   :  { %v53_v17 = vsub.s32 32, %v52_v14  ;;  %v55_v19 = vshll.u32 %v203_v18, %v52_v14  ;;  %v58_v21 = vshll.u32 %v204_v20, %v52_v14  ;;  %v61_v23 = vshll.u32 %v205_v22, %v52_v14 }
  0x17   :  { %v64_v25 = vshll.u32 %v206_v24, %v52_v14  ;;  %v67_v27 = vshll.u32 %v207_v26, %v52_v14  ;;  %vm70_vm1 = vcmp.lt.s32.totalorder %v51_v16, 1  ;;  %vm73_vm2 = vcmp.lt.s32.totalorder %v51_v16, 4 }
  0x18   :  { %v54_v28 = vshrl.u32 %v203_v18, %v53_v17  ;;  %v56_v29 = vshrl.u32 %v204_v20, %v53_v17  ;;  %v59_v30 = vshrl.u32 %v205_v22, %v53_v17  ;;  %v62_v31 = vshrl.u32 %v206_v24, %v53_v17 }
  0x19   :  { %v65_v32 = vshrl.u32 %v207_v26, %v53_v17  ;;  %v68_v34 = vshrl.u32 %v208_v33, %v53_v17  ;;  %vm71_vm3 = vcmp.lt.s32.totalorder %v51_v16, 2  ;;  %vm72_vm4 = vcmp.lt.s32.totalorder %v51_v16, 3 }
  0x1a   :  { %v57_v36 = vor.u32 %v56_v29, %v55_v19  ;;  %v60_v37 = vor.u32 %v59_v30, %v58_v21  ;;  %v63_v38 = vor.u32 %v62_v31, %v61_v23  ;;  %v143_v33 = vstv %s263_s0 }
  0x1b   :  { %v66_v39 = vor.u32 %v65_v32, %v64_v25  ;;  %v69_v40 = vor.u32 %v68_v34, %v67_v27 }
  0x1c   :  { %v74_v41 = vsel %vm70_vm1, %v54_v28, %v57_v36  ;;  %v75_v42 = vsel %vm73_vm2, %v63_v38, 2102212464  ;;  %v78_v43 = vsel %vm70_vm1, %v57_v36, %v60_v37  ;;  %v82_v44 = vsel %vm70_vm1, %v60_v37, %v63_v38 }
  0x1d   :  { %v76_v45 = vsel %vm72_vm4, %v60_v37, %v75_v42  ;;  %v79_v46 = vsel %vm73_vm2, %v66_v39, 920167782  ;;  %v83_v47 = vsel %vm73_vm2, %v69_v40, 1326507024 }
  0x1e   :  { %v80_v48 = vsel %vm72_vm4, %v63_v38, %v79_v46  ;;  %v84_v49 = vsel %vm72_vm4, %v66_v39, %v83_v47  ;;  %v77_v50 = vsel %vm71_vm3, %v74_v41, %v76_v45 }
  0x1f   :  { %v81_v51 = vsel %vm71_vm3, %v78_v43, %v80_v48  ;;  %v85_v52 = vsel %vm71_vm3, %v82_v44, %v84_v49  ;;  %v93_v57 = vmul.u32 %v86_v35, %v77_v50 }
  0x20   :  { %v242_v53 = vmul.u32.u64.low %v86_v35, %v85_v52  ;;  %v243_v54 = vmul.u32.u64.high %v86_v35, %v85_v52, %v242_v53  ;;  %v245_v55 = vmul.u32.u64.low %v86_v35, %v81_v51  ;;  %v246_v56 = vmul.u32.u64.high %v86_v35, %v81_v51, %v245_v55 }
  0x22   :  { %vm95_vm5 = vc.u32 %v243_v54, %v245_v55  ;;  %v96_v58 = vadd.s32 1, %v246_v56  ;;  %v94_v5 = vadd.s32 %v245_v55, %v243_v54 }
  0x24   :  { %v97_v59 = vsel %vm95_vm5, %v96_v58, %v246_v56 }
  0x25   :  { %v98_v60 = vadd.s32 %v97_v59, %v93_v57 }
  0x27   :  { %v99_v61 = vadd.s32 536870912, %v98_v60 }
  0x29   :  { %v100_v62 = vshrl.u32 %v99_v61, 30 }
  0x2b   :  { %v101_v63 = vshll.u32 %v100_v62, 30  ;;  %v124_v20 = vsub.s32 4, %v100_v62 }
  0x2d   :  { %v102_v0 = vsub.s32 %v98_v60, %v101_v63  ;;  %v125_v23 = vsel %vm40_vm7, %v124_v20, %v100_v62 }
  0x2e   :  { %v127_v25 = vsel %vm39_vm8, 0, %v125_v23 }
  0x2f   :  { %v104_v1 = vsub.s32 0, %v102_v0  ;;  %v131_v26 = vadd.s32 3, %v127_v25 }
  0x31   :  { %v163_v2 = vmin.u32 %v104_v1, %v102_v0  ;;  %v132_v27 = vand.u32 3, %v131_v26 }
  0x33   :  { %v106_v3 = vclz %v163_v2  ;;  %vm137_vm9 = vcmp.eq.s32.totalorder %v132_v27, 2  ;;  %vm134_vm10 = vcmp.eq.s32.totalorder %v132_v27, 0  ;;  %vm133_vm11 = vcmp.lt.s32.totalorder %v132_v27, 2 }
  0x35   :  { %v164_v4 = vadd.s32 4294967294, %v106_v3 }
  0x37   :  { %vm165_vm6 = vcmp.lt.s32.totalorder %v164_v4, 0 }
  0x38   :  { %v109_v7 = vsel %vm165_vm6, 0, %v164_v4 }
  0x39   :  { %v110_v8 = vsub.s32 32, %v109_v7  ;;  %v111_v10 = vshll.u32 %v102_v0, %v109_v7  ;;  %v114_v11 = vsub.s32 4294967266, %v109_v7 }
  0x3b   :  { %v112_v12 = vshrl.u32 %v94_v5, %v110_v8  ;;  %v115_v13 = vadd.s32 127, %v114_v11 }
  0x3d   :  { %v113_v14 = vor.u32 %v112_v12, %v111_v10  ;;  %v116_v15 = vshll.u32 %v115_v13, 23 }
  0x3f   :  { %v117_v16 = vor.u32 4788187, %v116_v15  ;;  %v120_v17 = vcvt.s32.f32 %v113_v14 }
  0x41   :  { %v118_v18 = vand.u32 2147483647, %v117_v16 }
  0x43   :  { %v121_v19 = vmul.f32 %v120_v17, %v118_v18 }
  0x45   :  { %v122_v21 = vxor.u32 2147483648, %v121_v19 }
  0x47   :  { %v123_v22 = vsel %vm40_vm7, %v122_v21, %v121_v19 }
  0x48   :  { %v126_v24 = vsel %vm39_vm8, %v236_v6, %v123_v22 }
  0x49   :  { %177 = vcosq.f32 %v126_v24 }
  0x4a   :  { %179 = vsinq.f32 %v126_v24 }
  0x56   :  { %v178_v28 = vpop.eup %177 }
  0x57   :  { %v180_v29 = vpop.eup %179  ;;  %v138_v30 = vxor.u32 2147483648, %v178_v28 }
  0x58   :  { %v135_v31 = vxor.u32 2147483648, %v180_v29 }
  0x59   :  { %v139_v9 = vsel %vm137_vm9, %v138_v30, %v180_v29 }
  0x5a   :  { %v136_v32 = vsel %vm134_vm10, %v178_v28, %v135_v31 }
  0x5b   :  { %v140_v34 = vsel %vm133_vm11, %v136_v32, %v139_v9 }
  0x5c   :  { %v141_v35 = vsel %vm130_vm12, nan, %v140_v34 }
  0x5d   :  { %v144_v36 = vmul.f32 %v143_v33, %v141_v35 }
  0x5f   :  { %145 = vst [vmem:[#allocation3] sm:$0x3] %v144_v36 }
  0x60   :  { %192 = shalt.err (!%p189_p4)
}
  0x61   :  { %155 = dma.vmem_to_hbm [thread:$0]  %s153_s17, 32, %s266_s3, [#allocation4]  }
  0x62   :  { %201 = dma.done.wait [#allocation4], 32  }
  0x63   :  { %202 = vsyncadd [#allocation4], 4294967264 }
  0x64   :  { %159 = vsyncpa [#allocation4], 1 }

</bundles_post_ra>
